<compile_context>
chip_gen: v6e
topology: v6e:2x2x1
jax: 0.10.0
libtpu: 0.0.40
codegen_flags: <defaults>
</compile_context>

<pallas_src>
import jax
import jax.numpy as jnp
from jax import lax
from jax.experimental import pallas as pl
from jax.experimental.pallas import tpu as pltpu

NUM_LAYERS = 5                 # total linear layers
HIDDEN = 50
OUTPUT = 2
INPUT = 1
LN_EPS = 1e-5                  # PyTorch nn.LayerNorm default
N_HIDDEN = NUM_LAYERS - 1      # 4 (Linear -> LayerNorm -> relu^3) blocks
INV_H = 1.0 / HIDDEN

# vec_pack row layout ([N_VEC_ROWS, HIDDEN]):
#   0       : W0 row (first-layer weight; input_size == 1)
#   1..4    : b0..b3 (hidden linear biases)
#   5       : final bias, zero-padded to HIDDEN (first OUTPUT entries valid)
#   6..9    : LayerNorm gammas 0..3
#   10..13  : LayerNorm betas  0..3
ROW_W0 = 0
ROW_B = 1
ROW_BF = 5
ROW_G = 6
ROW_BETA = 10
N_VEC_ROWS = 14


def _ln_relu_cube(y, g, beta):
    """LayerNorm (single-pass stats over exactly HIDDEN features) -> relu(.)**3."""
    s1 = jnp.sum(y, axis=-1, keepdims=True)            # [B, 1]
    s2 = jnp.sum(y * y, axis=-1, keepdims=True)        # [B, 1]  (independent reduce)
    mu = s1 * INV_H
    var = jnp.maximum(s2 * INV_H - mu * mu, 0.0)        # biased variance, like torch
    yn = (y - mu) * lax.rsqrt(var + LN_EPS)
    yn = yn * g + beta
    r = jnp.maximum(yn, 0.0)
    return r * r * r                                    # relu(x) ** 3


def mlp_kernel(x_ref, w_ref, vec_ref, out_ref):
    x = x_ref[...]                                      # [B, INPUT] f32
    vec = vec_ref[...]                                  # [N_VEC_ROWS, HIDDEN]

    # Layer 0: K=1 contraction done as a VPU broadcast (outer product), no MXU hop.
    w0 = vec[ROW_W0:ROW_W0 + 1, :]                      # [1, HIDDEN]
    y = x * w0 + vec[ROW_B:ROW_B + 1, :]                # [B, HIDDEN]
    h = _ln_relu_cube(y, vec[ROW_G:ROW_G + 1, :], vec[ROW_BETA:ROW_BETA + 1, :])

    # Hidden layers 1..3: [B,50] x [50,50] on the MXU.
    for i in range(1, N_HIDDEN):
        y = (jnp.dot(h, w_ref[i - 1], preferred_element_type=jnp.float32)
             + vec[ROW_B + i:ROW_B + i + 1, :])
        h = _ln_relu_cube(y,
                          vec[ROW_G + i:ROW_G + i + 1, :],
                          vec[ROW_BETA + i:ROW_BETA + i + 1, :])

    # Final linear: Wf zero-padded to [HIDDEN, HIDDEN]; only first OUTPUT cols valid.
    yf = (jnp.dot(h, w_ref[N_HIDDEN - 1], preferred_element_type=jnp.float32)
          + vec[ROW_BF:ROW_BF + 1, :])
    out_ref[...] = yf[:, :OUTPUT].astype(out_ref.dtype)


def init_params(key):
    """Deterministic init mimicking PyTorch nn.Linear default U[-1/sqrt(fan_in), ...]."""
    dims = [INPUT] + [HIDDEN] * (NUM_LAYERS - 1) + [OUTPUT]
    keys = jax.random.split(key, 2 * NUM_LAYERS)
    linears, lns = [], []
    for li in range(NUM_LAYERS):
        fan_in, fan_out = dims[li], dims[li + 1]
        bound = fan_in ** -0.5
        w = jax.random.uniform(keys[2 * li], (fan_in, fan_out),
                               minval=-bound, maxval=bound, dtype=jnp.float32)
        b = jax.random.uniform(keys[2 * li + 1], (fan_out,),
                               minval=-bound, maxval=bound, dtype=jnp.float32)
        linears.append((w, b))
        if li < NUM_LAYERS - 1:
            # LayerNorm affine params: weight=1, bias=0 (PyTorch default)
            lns.append((jnp.ones((fan_out,), jnp.float32),
                        jnp.zeros((fan_out,), jnp.float32)))
    return linears, lns


def pack_params(linears, lns):
    """Pack all parameters into 2 arrays so the kernel does 3 input DMAs total."""
    # [N_HIDDEN, HIDDEN, HIDDEN]: W1, W2, W3 and zero-padded final weight.
    w_slabs = [linears[i][0] for i in range(1, N_HIDDEN)]
    wf_pad = jnp.zeros((HIDDEN, HIDDEN), jnp.float32).at[:, :OUTPUT].set(linears[-1][0])
    w_stack = jnp.stack(w_slabs + [wf_pad], axis=0)

    rows = [None] * N_VEC_ROWS
    rows[ROW_W0] = linears[0][0].reshape(HIDDEN)        # W0 is [1, HIDDEN]
    for i in range(N_HIDDEN):
        rows[ROW_B + i] = linears[i][1]
        rows[ROW_G + i] = lns[i][0]
        rows[ROW_BETA + i] = lns[i][1]
    rows[ROW_BF] = jnp.zeros((HIDDEN,), jnp.float32).at[:OUTPUT].set(linears[-1][1])
    vec_pack = jnp.stack(rows, axis=0)                  # [N_VEC_ROWS, HIDDEN]
    return w_stack, vec_pack


@jax.jit
def normal_multilayers_forward(x, w_stack, vec_pack):
    B = x.shape[0]
    # Single grid step: whole problem (~50 KB of params + tiny activations) sits
    # in VMEM.  If B ever grows past a few hundred rows, add a 1-D "parallel"
    # grid over B (tile x / out only, keep params resident) — not needed here.
    return pl.pallas_call(
        mlp_kernel,
        out_shape=jax.ShapeDtypeStruct((B, OUTPUT), jnp.float32),
        in_specs=[pl.BlockSpec(memory_space=pltpu.MemorySpace.VMEM)] * 3,
        out_specs=pl.BlockSpec(memory_space=pltpu.MemorySpace.VMEM),
    )(x, w_stack, vec_pack)


def reference_forward(x, linears, lns):
    """Pure-JAX reference (matches the PyTorch module) for correctness checking."""
    h = x.astype(jnp.float32)
    for i in range(N_HIDDEN):
        w, b = linears[i]
        y = h @ w + b
        mu = jnp.mean(y, axis=-1, keepdims=True)
        var = jnp.mean((y - mu) ** 2, axis=-1, keepdims=True)
        yn = (y - mu) / jnp.sqrt(var + LN_EPS) * lns[i][0] + lns[i][1]
        h = jnp.maximum(yn, 0.0) ** 3
    wf, bf = linears[-1]
    return h @ wf + bf


if __name__ == "__main__":
    key = jax.random.PRNGKey(0)
    pkey, xkey = jax.random.split(key)

    linears, lns = init_params(pkey)
    w_stack, vec_pack = pack_params(linears, lns)

    B = 8
    x = jax.random.normal(xkey, (B, INPUT), dtype=jnp.float32)

    out = normal_multilayers_forward(x, w_stack, vec_pack)
    out = jax.block_until_ready(out)

    ref = reference_forward(x, linears, lns)
    assert out.shape == (B, OUTPUT)
    assert jnp.allclose(out, ref, atol=2e-4, rtol=2e-4), "kernel mismatch vs reference"

    print("KERNEL_OK")
</pallas_src>

<mosaic_0001>
module attributes {stable_mosaic.version = 11 : i64} {
  func.func @mlp_kernel(%arg0: memref<8x1xf32, #tpu.memory_space<vmem>>, %arg1: memref<4x50x50xf32, #tpu.memory_space<vmem>>, %arg2: memref<14x50xf32, #tpu.memory_space<vmem>>, %arg3: memref<8x2xf32, #tpu.memory_space<vmem>>) attributes {dimension_semantics = [], scalar_prefetch = 0 : i64, scratch_operands = 0 : i64, tpu.core_type = #tpu.core_type<tc>} {
    %c0 = arith.constant 0 : index
    %c0_0 = arith.constant 0 : index
    %0 = vector.load %arg0[%c0, %c0_0] : memref<8x1xf32, #tpu.memory_space<vmem>>, vector<8x1xf32>
    %c0_1 = arith.constant 0 : index
    %c0_2 = arith.constant 0 : index
    %1 = vector.load %arg2[%c0_1, %c0_2] : memref<14x50xf32, #tpu.memory_space<vmem>>, vector<14x50xf32>
    %2 = vector.extract_strided_slice %1 {offsets = [0, 0], sizes = [1, 50], strides = [1, 1]} : vector<14x50xf32> to vector<1x50xf32>
    %3 = vector.broadcast %0 : vector<8x1xf32> to vector<8x50xf32>
    %4 = vector.broadcast %2 : vector<1x50xf32> to vector<8x50xf32>
    %5 = arith.mulf %3, %4 : vector<8x50xf32>
    %6 = vector.extract_strided_slice %1 {offsets = [1, 0], sizes = [1, 50], strides = [1, 1]} : vector<14x50xf32> to vector<1x50xf32>
    %7 = vector.broadcast %6 : vector<1x50xf32> to vector<8x50xf32>
    %8 = arith.addf %5, %7 : vector<8x50xf32>
    %9 = vector.extract_strided_slice %1 {offsets = [6, 0], sizes = [1, 50], strides = [1, 1]} : vector<14x50xf32> to vector<1x50xf32>
    %10 = vector.extract_strided_slice %1 {offsets = [10, 0], sizes = [1, 50], strides = [1, 1]} : vector<14x50xf32> to vector<1x50xf32>
    %cst = arith.constant dense<0.000000e+00> : vector<8xf32>
    %11 = vector.multi_reduction <add>, %8, %cst [1] : vector<8x50xf32> to vector<8xf32>
    %12 = vector.shape_cast %11 : vector<8xf32> to vector<8x1xf32>
    %13 = arith.mulf %8, %8 : vector<8x50xf32>
    %cst_3 = arith.constant dense<0.000000e+00> : vector<8xf32>
    %14 = vector.multi_reduction <add>, %13, %cst_3 [1] : vector<8x50xf32> to vector<8xf32>
    %15 = vector.shape_cast %14 : vector<8xf32> to vector<8x1xf32>
    %cst_4 = arith.constant 2.000000e-02 : f32
    %16 = vector.broadcast %cst_4 : f32 to vector<8x1xf32>
    %17 = arith.mulf %12, %16 : vector<8x1xf32>
    %cst_5 = arith.constant 2.000000e-02 : f32
    %18 = vector.broadcast %cst_5 : f32 to vector<8x1xf32>
    %19 = arith.mulf %15, %18 : vector<8x1xf32>
    %20 = arith.mulf %17, %17 : vector<8x1xf32>
    %21 = arith.subf %19, %20 : vector<8x1xf32>
    %cst_6 = arith.constant 0.000000e+00 : f32
    %22 = vector.broadcast %cst_6 : f32 to vector<8x1xf32>
    %23 = arith.maximumf %21, %22 : vector<8x1xf32>
    %24 = vector.broadcast %17 : vector<8x1xf32> to vector<8x50xf32>
    %25 = arith.subf %8, %24 : vector<8x50xf32>
    %cst_7 = arith.constant 9.99999974E-6 : f32
    %26 = vector.broadcast %cst_7 : f32 to vector<8x1xf32>
    %27 = arith.addf %23, %26 : vector<8x1xf32>
    %28 = math.rsqrt %27 : vector<8x1xf32>
    %29 = vector.broadcast %28 : vector<8x1xf32> to vector<8x50xf32>
    %30 = arith.mulf %25, %29 : vector<8x50xf32>
    %31 = vector.broadcast %9 : vector<1x50xf32> to vector<8x50xf32>
    %32 = arith.mulf %30, %31 : vector<8x50xf32>
    %33 = vector.broadcast %10 : vector<1x50xf32> to vector<8x50xf32>
    %34 = arith.addf %32, %33 : vector<8x50xf32>
    %cst_8 = arith.constant 0.000000e+00 : f32
    %35 = vector.broadcast %cst_8 : f32 to vector<8x50xf32>
    %36 = arith.maximumf %34, %35 : vector<8x50xf32>
    %37 = arith.mulf %36, %36 : vector<8x50xf32>
    %38 = arith.mulf %37, %36 : vector<8x50xf32>
    %c0_9 = arith.constant 0 : index
    %c0_10 = arith.constant 0 : index
    %c0_11 = arith.constant 0 : index
    %39 = vector.load %arg1[%c0_9, %c0_10, %c0_11] : memref<4x50x50xf32, #tpu.memory_space<vmem>>, vector<1x50x50xf32>
    %40 = vector.shape_cast %39 : vector<1x50x50xf32> to vector<50x50xf32>
    %cst_12 = arith.constant dense<0.000000e+00> : vector<8x50xf32>
    %41 = tpu.matmul %38, %40, %cst_12 {dimension_numbers = #tpu.dot_dimension_numbers<[1], [0], [0], [1], [0, 0, 1, 1], [], []>} : vector<8x50xf32>, vector<50x50xf32>, vector<8x50xf32> -> vector<8x50xf32>
    %42 = vector.extract_strided_slice %1 {offsets = [2, 0], sizes = [1, 50], strides = [1, 1]} : vector<14x50xf32> to vector<1x50xf32>
    %43 = vector.broadcast %42 : vector<1x50xf32> to vector<8x50xf32>
    %44 = arith.addf %41, %43 : vector<8x50xf32>
    %45 = vector.extract_strided_slice %1 {offsets = [7, 0], sizes = [1, 50], strides = [1, 1]} : vector<14x50xf32> to vector<1x50xf32>
    %46 = vector.extract_strided_slice %1 {offsets = [11, 0], sizes = [1, 50], strides = [1, 1]} : vector<14x50xf32> to vector<1x50xf32>
    %cst_13 = arith.constant dense<0.000000e+00> : vector<8xf32>
    %47 = vector.multi_reduction <add>, %44, %cst_13 [1] : vector<8x50xf32> to vector<8xf32>
    %48 = vector.shape_cast %47 : vector<8xf32> to vector<8x1xf32>
    %49 = arith.mulf %44, %44 : vector<8x50xf32>
    %cst_14 = arith.constant dense<0.000000e+00> : vector<8xf32>
    %50 = vector.multi_reduction <add>, %49, %cst_14 [1] : vector<8x50xf32> to vector<8xf32>
    %51 = vector.shape_cast %50 : vector<8xf32> to vector<8x1xf32>
    %cst_15 = arith.constant 2.000000e-02 : f32
    %52 = vector.broadcast %cst_15 : f32 to vector<8x1xf32>
    %53 = arith.mulf %48, %52 : vector<8x1xf32>
    %cst_16 = arith.constant 2.000000e-02 : f32
    %54 = vector.broadcast %cst_16 : f32 to vector<8x1xf32>
    %55 = arith.mulf %51, %54 : vector<8x1xf32>
    %56 = arith.mulf %53, %53 : vector<8x1xf32>
    %57 = arith.subf %55, %56 : vector<8x1xf32>
    %cst_17 = arith.constant 0.000000e+00 : f32
    %58 = vector.broadcast %cst_17 : f32 to vector<8x1xf32>
    %59 = arith.maximumf %57, %58 : vector<8x1xf32>
    %60 = vector.broadcast %53 : vector<8x1xf32> to vector<8x50xf32>
    %61 = arith.subf %44, %60 : vector<8x50xf32>
    %cst_18 = arith.constant 9.99999974E-6 : f32
    %62 = vector.broadcast %cst_18 : f32 to vector<8x1xf32>
    %63 = arith.addf %59, %62 : vector<8x1xf32>
    %64 = math.rsqrt %63 : vector<8x1xf32>
    %65 = vector.broadcast %64 : vector<8x1xf32> to vector<8x50xf32>
    %66 = arith.mulf %61, %65 : vector<8x50xf32>
    %67 = vector.broadcast %45 : vector<1x50xf32> to vector<8x50xf32>
    %68 = arith.mulf %66, %67 : vector<8x50xf32>
    %69 = vector.broadcast %46 : vector<1x50xf32> to vector<8x50xf32>
    %70 = arith.addf %68, %69 : vector<8x50xf32>
    %cst_19 = arith.constant 0.000000e+00 : f32
    %71 = vector.broadcast %cst_19 : f32 to vector<8x50xf32>
    %72 = arith.maximumf %70, %71 : vector<8x50xf32>
    %73 = arith.mulf %72, %72 : vector<8x50xf32>
    %74 = arith.mulf %73, %72 : vector<8x50xf32>
    %c1 = arith.constant 1 : index
    %c0_20 = arith.constant 0 : index
    %c0_21 = arith.constant 0 : index
    %75 = vector.load %arg1[%c1, %c0_20, %c0_21] : memref<4x50x50xf32, #tpu.memory_space<vmem>>, vector<1x50x50xf32>
    %76 = vector.shape_cast %75 : vector<1x50x50xf32> to vector<50x50xf32>
    %cst_22 = arith.constant dense<0.000000e+00> : vector<8x50xf32>
    %77 = tpu.matmul %74, %76, %cst_22 {dimension_numbers = #tpu.dot_dimension_numbers<[1], [0], [0], [1], [0, 0, 1, 1], [], []>} : vector<8x50xf32>, vector<50x50xf32>, vector<8x50xf32> -> vector<8x50xf32>
    %78 = vector.extract_strided_slice %1 {offsets = [3, 0], sizes = [1, 50], strides = [1, 1]} : vector<14x50xf32> to vector<1x50xf32>
    %79 = vector.broadcast %78 : vector<1x50xf32> to vector<8x50xf32>
    %80 = arith.addf %77, %79 : vector<8x50xf32>
    %81 = vector.extract_strided_slice %1 {offsets = [8, 0], sizes = [1, 50], strides = [1, 1]} : vector<14x50xf32> to vector<1x50xf32>
    %82 = vector.extract_strided_slice %1 {offsets = [12, 0], sizes = [1, 50], strides = [1, 1]} : vector<14x50xf32> to vector<1x50xf32>
    %cst_23 = arith.constant dense<0.000000e+00> : vector<8xf32>
    %83 = vector.multi_reduction <add>, %80, %cst_23 [1] : vector<8x50xf32> to vector<8xf32>
    %84 = vector.shape_cast %83 : vector<8xf32> to vector<8x1xf32>
    %85 = arith.mulf %80, %80 : vector<8x50xf32>
    %cst_24 = arith.constant dense<0.000000e+00> : vector<8xf32>
    %86 = vector.multi_reduction <add>, %85, %cst_24 [1] : vector<8x50xf32> to vector<8xf32>
    %87 = vector.shape_cast %86 : vector<8xf32> to vector<8x1xf32>
    %cst_25 = arith.constant 2.000000e-02 : f32
    %88 = vector.broadcast %cst_25 : f32 to vector<8x1xf32>
    %89 = arith.mulf %84, %88 : vector<8x1xf32>
    %cst_26 = arith.constant 2.000000e-02 : f32
    %90 = vector.broadcast %cst_26 : f32 to vector<8x1xf32>
    %91 = arith.mulf %87, %90 : vector<8x1xf32>
    %92 = arith.mulf %89, %89 : vector<8x1xf32>
    %93 = arith.subf %91, %92 : vector<8x1xf32>
    %cst_27 = arith.constant 0.000000e+00 : f32
    %94 = vector.broadcast %cst_27 : f32 to vector<8x1xf32>
    %95 = arith.maximumf %93, %94 : vector<8x1xf32>
    %96 = vector.broadcast %89 : vector<8x1xf32> to vector<8x50xf32>
    %97 = arith.subf %80, %96 : vector<8x50xf32>
    %cst_28 = arith.constant 9.99999974E-6 : f32
    %98 = vector.broadcast %cst_28 : f32 to vector<8x1xf32>
    %99 = arith.addf %95, %98 : vector<8x1xf32>
    %100 = math.rsqrt %99 : vector<8x1xf32>
    %101 = vector.broadcast %100 : vector<8x1xf32> to vector<8x50xf32>
    %102 = arith.mulf %97, %101 : vector<8x50xf32>
    %103 = vector.broadcast %81 : vector<1x50xf32> to vector<8x50xf32>
    %104 = arith.mulf %102, %103 : vector<8x50xf32>
    %105 = vector.broadcast %82 : vector<1x50xf32> to vector<8x50xf32>
    %106 = arith.addf %104, %105 : vector<8x50xf32>
    %cst_29 = arith.constant 0.000000e+00 : f32
    %107 = vector.broadcast %cst_29 : f32 to vector<8x50xf32>
    %108 = arith.maximumf %106, %107 : vector<8x50xf32>
    %109 = arith.mulf %108, %108 : vector<8x50xf32>
    %110 = arith.mulf %109, %108 : vector<8x50xf32>
    %c2 = arith.constant 2 : index
    %c0_30 = arith.constant 0 : index
    %c0_31 = arith.constant 0 : index
    %111 = vector.load %arg1[%c2, %c0_30, %c0_31] : memref<4x50x50xf32, #tpu.memory_space<vmem>>, vector<1x50x50xf32>
    %112 = vector.shape_cast %111 : vector<1x50x50xf32> to vector<50x50xf32>
    %cst_32 = arith.constant dense<0.000000e+00> : vector<8x50xf32>
    %113 = tpu.matmul %110, %112, %cst_32 {dimension_numbers = #tpu.dot_dimension_numbers<[1], [0], [0], [1], [0, 0, 1, 1], [], []>} : vector<8x50xf32>, vector<50x50xf32>, vector<8x50xf32> -> vector<8x50xf32>
    %114 = vector.extract_strided_slice %1 {offsets = [4, 0], sizes = [1, 50], strides = [1, 1]} : vector<14x50xf32> to vector<1x50xf32>
    %115 = vector.broadcast %114 : vector<1x50xf32> to vector<8x50xf32>
    %116 = arith.addf %113, %115 : vector<8x50xf32>
    %117 = vector.extract_strided_slice %1 {offsets = [9, 0], sizes = [1, 50], strides = [1, 1]} : vector<14x50xf32> to vector<1x50xf32>
    %118 = vector.extract_strided_slice %1 {offsets = [13, 0], sizes = [1, 50], strides = [1, 1]} : vector<14x50xf32> to vector<1x50xf32>
    %cst_33 = arith.constant dense<0.000000e+00> : vector<8xf32>
    %119 = vector.multi_reduction <add>, %116, %cst_33 [1] : vector<8x50xf32> to vector<8xf32>
    %120 = vector.shape_cast %119 : vector<8xf32> to vector<8x1xf32>
    %121 = arith.mulf %116, %116 : vector<8x50xf32>
    %cst_34 = arith.constant dense<0.000000e+00> : vector<8xf32>
    %122 = vector.multi_reduction <add>, %121, %cst_34 [1] : vector<8x50xf32> to vector<8xf32>
    %123 = vector.shape_cast %122 : vector<8xf32> to vector<8x1xf32>
    %cst_35 = arith.constant 2.000000e-02 : f32
    %124 = vector.broadcast %cst_35 : f32 to vector<8x1xf32>
    %125 = arith.mulf %120, %124 : vector<8x1xf32>
    %cst_36 = arith.constant 2.000000e-02 : f32
    %126 = vector.broadcast %cst_36 : f32 to vector<8x1xf32>
    %127 = arith.mulf %123, %126 : vector<8x1xf32>
    %128 = arith.mulf %125, %125 : vector<8x1xf32>
    %129 = arith.subf %127, %128 : vector<8x1xf32>
    %cst_37 = arith.constant 0.000000e+00 : f32
    %130 = vector.broadcast %cst_37 : f32 to vector<8x1xf32>
    %131 = arith.maximumf %129, %130 : vector<8x1xf32>
    %132 = vector.broadcast %125 : vector<8x1xf32> to vector<8x50xf32>
    %133 = arith.subf %116, %132 : vector<8x50xf32>
    %cst_38 = arith.constant 9.99999974E-6 : f32
    %134 = vector.broadcast %cst_38 : f32 to vector<8x1xf32>
    %135 = arith.addf %131, %134 : vector<8x1xf32>
    %136 = math.rsqrt %135 : vector<8x1xf32>
    %137 = vector.broadcast %136 : vector<8x1xf32> to vector<8x50xf32>
    %138 = arith.mulf %133, %137 : vector<8x50xf32>
    %139 = vector.broadcast %117 : vector<1x50xf32> to vector<8x50xf32>
    %140 = arith.mulf %138, %139 : vector<8x50xf32>
    %141 = vector.broadcast %118 : vector<1x50xf32> to vector<8x50xf32>
    %142 = arith.addf %140, %141 : vector<8x50xf32>
    %cst_39 = arith.constant 0.000000e+00 : f32
    %143 = vector.broadcast %cst_39 : f32 to vector<8x50xf32>
    %144 = arith.maximumf %142, %143 : vector<8x50xf32>
    %145 = arith.mulf %144, %144 : vector<8x50xf32>
    %146 = arith.mulf %145, %144 : vector<8x50xf32>
    %c3 = arith.constant 3 : index
    %c0_40 = arith.constant 0 : index
    %c0_41 = arith.constant 0 : index
    %147 = vector.load %arg1[%c3, %c0_40, %c0_41] : memref<4x50x50xf32, #tpu.memory_space<vmem>>, vector<1x50x50xf32>
    %148 = vector.shape_cast %147 : vector<1x50x50xf32> to vector<50x50xf32>
    %cst_42 = arith.constant dense<0.000000e+00> : vector<8x50xf32>
    %149 = tpu.matmul %146, %148, %cst_42 {dimension_numbers = #tpu.dot_dimension_numbers<[1], [0], [0], [1], [0, 0, 1, 1], [], []>} : vector<8x50xf32>, vector<50x50xf32>, vector<8x50xf32> -> vector<8x50xf32>
    %150 = vector.extract_strided_slice %1 {offsets = [5, 0], sizes = [1, 50], strides = [1, 1]} : vector<14x50xf32> to vector<1x50xf32>
    %151 = vector.broadcast %150 : vector<1x50xf32> to vector<8x50xf32>
    %152 = arith.addf %149, %151 : vector<8x50xf32>
    %153 = vector.extract_strided_slice %152 {offsets = [0, 0], sizes = [8, 2], strides = [1, 1]} : vector<8x50xf32> to vector<8x2xf32>
    %c0_43 = arith.constant 0 : index
    %c0_44 = arith.constant 0 : index
    %154 = vector.load %arg3[%c0_43, %c0_44] : memref<8x2xf32, #tpu.memory_space<vmem>>, vector<8x2xf32>
    tpu.vector_store %arg3[%c0_43, %c0_44], %153 {strides = array<i32>} : memref<8x2xf32, #tpu.memory_space<vmem>>, vector<8x2xf32>,
    return
  }
}

</mosaic_0001>

<bundles_post_ra>
// kernel: normal_multilayers_forward.1
= control target key start
LH: loop header
LB: loop body
LE: loop exit
PB: predicated region body
PF: predicated region fallthrough
CT: control target
= control target key end

     0   :  { %v648_v0 = vmov 0   ;;  %v22_v2 = vlaneseq  ;;  %vm32_vm0 = vcmask 408576   ;;  %vm76_vm1 = vcmask 1041408   ;;  %s855_s0 = inlined_call_operand.vmem [shape: f32[8,1], index: 0, kind: input, shape index: {}]   ;;  %s856_s2 = inlined_call_operand.vmem [shape: f32[14,50], index: 2, kind: input, shape index: {}]   ;;  %s857_s1 = inlined_call_operand.vmem [shape: f32[4,50,50], index: 1, kind: input, shape index: {}]   ;;  %s858_s3 = inlined_call_operand.vmem [shape: f32[8,2], index: 3, kind: output, shape index: {}]  }
   0x1   :  { %639 = vset.pattern.permute.xlu0 %v648_v0  ;;  %v14_v1 = vld [vmem:[%s855_s0] sm:$0xff]  ;;  %v649_v15 = vmov 0.0   ;;  %v68_v16 = vld [vmem:[%s857_s1 + $0x30] sm:$0x3]  ;;  %v67_v17 = vld [vmem:[%s857_s1 + $0x28] sm:$0xff]  ;;  %vm650_vm2 = vmmov 0  }
   0x2   :  { %19 = vperm.xlu0 %639, %v14_v1   ;;  %v674_v3 = vshrl.u32 %v22_v2, 7  ;;  %v680_v5 = vld [vmem:[%s856_s2] sm:$0xff]  ;;  %568 = vmatprep.subr.mxu0 %v649_v15  ;;  %v65_v19 = vld [vmem:[%s857_s1 + $0x18] sm:$0xff]  ;;  %v64_v20 = vld [vmem:[%s857_s1 + $0x10] sm:$0xff]  ;;  %vm501_vm3 = vcmask 15360  }
   0x3   :  { %582 = vmatprep.mubr.msk.f32.mxu0 %vm650_vm2, %v649_v15  ;;  %569 = vmatpush3.msk.msra.mxu0 %vm76_vm1, %v68_v16  ;;  %v66_v18 = vld [vmem:[%s857_s1 + $0x20] sm:$0xff]  ;;  %v63_v21 = vld [vmem:[%s857_s1 + $0x8] sm:$0xff]  ;;  %v513_v53 = vld [vmem:[%s857_s1 + $0x58] sm:$0xff] }
   0x4   :  { %v24_v4 = vsub.s32 0, %v674_v3  ;;  %v29_v6 = vsub.s32 1, %v674_v3  ;;  %585 = vmatprep.subr.mxu1 %v649_v15  ;;  %570 = vmatprep.subr.mxu0 %v649_v15  ;;  %v62_v22 = vld [vmem:[%s857_s1] sm:$0xff]  ;;  %v51_v31 = vsub.s32 6, %v674_v3  ;;  %v56_v32 = vsub.s32 2, %v674_v3  ;;  %v512_v54 = vld [vmem:[%s857_s1 + $0x50] sm:$0xff] }
   0x5   :  { %599 = vmatprep.mubr.msk.f32.mxu1 %vm650_vm2, %v649_v15  ;;  %571 = vmatpush3.msra.mxu0 %v67_v17  ;;  %v731_v33 = vld [vmem:[%s856_s2 + $0x8] sm:$0x3f]  ;;  %v514_v52 = vld [vmem:[%s857_s1 + $0x60] sm:$0xff]  ;;  %v509_v57 = vld [vmem:[%s857_s1 + $0x38] sm:$0xff]  ;;  %v168_v2 = vsub.s32 7, %v674_v3 }
   0x6   :  { %v25_v7 = vrot.slane %v680_v5, %v24_v4  ;;  %v30_v8 = vrot.slane %v680_v5, %v29_v6  ;;  %572 = vmatprep.subr.mxu0 %v649_v15  ;;  %v52_v35 = vrot.slane %v680_v5, %v51_v31  ;;  %v57_v38 = vrot.slane %v731_v33, %v56_v32  ;;  %v515_v51 = vld [vmem:[%s857_s1 + $0x68] sm:$0x3]  ;;  %v510_v56 = vld [vmem:[%s857_s1 + $0x40] sm:$0xff]  ;;  %v519_v31 = vld [vmem:[%s857_s1 + $0x78] sm:$0xff] }
   0x7   :  { %573 = vmatpush3.msra.mxu0 %v66_v18  ;;  %v72_v44 = vrot.slane %v680_v5, %v56_v32  ;;  %586 = vmatpush3.msk.msra.mxu1 %vm76_vm1, %v515_v51  ;;  %v511_v55 = vld [vmem:[%s857_s1 + $0x48] sm:$0xff]  ;;  %v518_v32 = vld [vmem:[%s857_s1 + $0x70] sm:$0xff] }
   0x8   :  { %574 = vmatprep.subr.mxu0 %v649_v15  ;;  %587 = vmatprep.subr.mxu1 %v649_v15 }
   0x9   :  { %575 = vmatpush3.msra.mxu0 %v65_v19  ;;  %588 = vmatpush3.msra.mxu1 %v514_v52 }
   0xa   :  { %576 = vmatprep.subr.mxu0 %v649_v15  ;;  %589 = vmatprep.subr.mxu1 %v649_v15 }
   0xb   :  { %577 = vmatpush3.msra.mxu0 %v64_v20  ;;  %590 = vmatpush3.msra.mxu1 %v513_v53 }
   0xc   :  { %578 = vmatprep.subr.mxu0 %v649_v15  ;;  %591 = vmatprep.subr.mxu1 %v649_v15 }
   0xd   :  { %579 = vmatpush3.msra.mxu0 %v63_v21  ;;  %592 = vmatpush3.msra.mxu1 %v512_v54 }
   0xe   :  { %580 = vmatprep.subr.mxu0 %v649_v15  ;;  %593 = vmatprep.subr.mxu1 %v649_v15 }
   0xf   :  { %581 = vmatpush3.msra.mxu0 %v62_v22  ;;  %594 = vmatpush3.msra.mxu1 %v511_v55 }
  0x10   :  { %602 = vmatprep.subr.mxu0 %v649_v15  ;;  %595 = vmatprep.subr.mxu1 %v649_v15 }
  0x11   :  { %596 = vmatpush3.msra.mxu1 %v510_v56 }
  0x12   :  { %597 = vmatprep.subr.mxu1 %v649_v15 }
  0x13   :  { %598 = vmatpush3.msra.mxu1 %v509_v57 }
  0x14   :  { %619 = vmatprep.subr.mxu1 %v649_v15 }
  0x7d   :  { %v20_v9 = vpop.permute.xlu0 %19 }
  0x7e   :  { %v26_v10 = vmul.f32 %v25_v7, %v20_v9  ;;  %v173_v7 = vsub.s32 3, %v674_v3  ;;  %v169_v9 = vrot.slane %v680_v5, %v168_v2 }
  0x80   :  { %v31_v11 = vadd.f32 %v30_v8, %v26_v10  ;;  %v190_v19 = vrot.slane %v680_v5, %v173_v7 }
  0x82   :  { %v33_v12 = vsel %vm32_vm0, %v31_v11, 0.0  ;;  %v36_v13 = vmul.f32 %v31_v11, %v31_v11 }
  0x83   :  { %34 = vadd.xlane.f32.xlu0 %v33_v12  ;;  %v174_v12 = vrot.slane %v731_v33, %v173_v7 }
  0x84   :  { %v37_v14 = vsel %vm32_vm0, %v36_v13, 0.0 }
  0x85   :  { %38 = vadd.xlane.f32.xlu1 %v37_v14 }
 0x10c   :  { %v35_v23 = vpop.xlane.xlu0 %34 }
 0x10d   :  { %v40_v24 = vmul.f32 0.02, %v35_v23 }
 0x10e   :  { %v39_v25 = vpop.xlane.xlu1 %38 }
 0x10f   :  { %v42_v26 = vmul.f32 %v40_v24, %v40_v24  ;;  %v41_v27 = vmul.f32 0.02, %v39_v25  ;;  %v45_v34 = vsub.f32 %v31_v11, %v40_v24 }
 0x111   :  { %v43_v28 = vsub.f32 %v41_v27, %v42_v26  ;;  %v524_v26 = vld [vmem:[%s857_s1 + $0xa0] sm:$0x3]  ;;  %v523_v27 = vld [vmem:[%s857_s1 + $0x98] sm:$0xff] }
 0x113   :  { %v44_v29 = vmax.f32 %v43_v28, 0.0  ;;  %v522_v28 = vld [vmem:[%s857_s1 + $0x90] sm:$0xff] }
 0x115   :  { %v46_v30 = vadd.f32 1e-05, %v44_v29  ;;  %v521_v29 = vld [vmem:[%s857_s1 + $0x88] sm:$0xff] }
 0x117   :  { %640 = vrsqrt.f32 %v46_v30  ;;  %v520_v30 = vld [vmem:[%s857_s1 + $0x80] sm:$0xff] }
 0x124   :  { %v641_v36 = vpop.eup %640 }
 0x125   :  { %v48_v37 = vmul.f32 %v641_v36, %v45_v34 }
 0x127   :  { %v53_v39 = vmul.f32 %v52_v35, %v48_v37 }
 0x129   :  { %v58_v40 = vadd.f32 %v57_v38, %v53_v39 }
 0x12b   :  { %v59_v41 = vmax.f32 %v58_v40, 0.0 }
 0x12d   :  { %v60_v42 = vmul.f32 %v59_v41, %v59_v41 }
 0x12f   :  { %v61_v43 = vmul.f32 %v60_v42, %v59_v41  ;;  %v290_v42 = vsub.s32 4, %v674_v3 }
 0x131   :  { %583 = vmatmul.mubr.msk.f32.vlgmr.msra.gmra.mxu0 %vm32_vm0, %v61_v43  ;;  %v286_v43 = vrot.slane %v731_v33, %v24_v4  ;;  %v307_v53 = vrot.slane %v680_v5, %v290_v42 }
 0x132   :  { %616 = vmatprep.mubr.msk.f32.mxu0 %vm650_vm2, %v649_v15  ;;  %603 = vmatpush3.msk.msra.mxu0 %vm76_vm1, %v524_v26 }
 0x133   :  { %604 = vmatprep.subr.mxu0 %v649_v15 }
 0x134   :  { %605 = vmatpush3.msra.mxu0 %v523_v27 }
 0x135   :  { %606 = vmatprep.subr.mxu0 %v649_v15 }
 0x136   :  { %607 = vmatpush3.msra.mxu0 %v522_v28 }
 0x137   :  { %608 = vmatprep.subr.mxu0 %v649_v15 }
 0x138   :  { %609 = vmatpush3.msra.mxu0 %v521_v29 }
 0x139   :  { %610 = vmatprep.subr.mxu0 %v649_v15 }
 0x13a   :  { %611 = vmatpush3.msra.mxu0 %v520_v30 }
 0x13b   :  { %612 = vmatprep.subr.mxu0 %v649_v15 }
 0x13c   :  { %613 = vmatpush3.msra.mxu0 %v519_v31 }
 0x13d   :  { %614 = vmatprep.subr.mxu0 %v649_v15 }
 0x13e   :  { %615 = vmatpush3.msra.mxu0 %v518_v32 }
 0x1f1   :  { %v146_v45 = vpop.f32.mrf.mxu0 }
 0x1f2   :  { %v147_v46 = vadd.f32 %v146_v45, %v72_v44 }
 0x1f3   :  { %v584_v47 = vpop.f32.mrf.mxu0 }
 0x1f4   :  { %v150_v48 = vsel %vm32_vm0, %v147_v46, 0.0  ;;  %v153_v49 = vmul.f32 %v147_v46, %v147_v46  ;;  %v291_v47 = vrot.slane %v731_v33, %v290_v42 }
 0x1f5   :  { %151 = vadd.xlane.f32.xlu1 %v150_v48 }
 0x1f6   :  { %v154_v50 = vsel %vm32_vm0, %v153_v49, 0.0 }
 0x1f9   :  { %155 = vadd.xlane.f32.xlu1 %v154_v50 }
 0x27e   :  { %v152_v58 = vpop.xlane.xlu1 %151 }
 0x27f   :  { %v157_v59 = vmul.f32 0.02, %v152_v58 }
 0x281   :  { %v159_v61 = vmul.f32 %v157_v59, %v157_v59  ;;  %v162_v8 = vsub.f32 %v147_v46, %v157_v59  ;;  %v533_v59 = vld [vmem:[%s857_s1 + $0xd8] sm:$0x3] }
 0x282   :  { %v156_v60 = vpop.xlane.xlu1 %155 }
 0x283   :  { %v158_v62 = vmul.f32 0.02, %v156_v60  ;;  %v532_v60 = vld [vmem:[%s857_s1 + $0xd0] sm:$0xff] }
 0x285   :  { %v160_v63 = vsub.f32 %v158_v62, %v159_v61  ;;  %v531_v61 = vld [vmem:[%s857_s1 + $0xc8] sm:$0xff]  ;;  %v530_v62 = vld [vmem:[%s857_s1 + $0xc0] sm:$0xff] }
 0x287   :  { %v161_v0 = vmax.f32 %v160_v63, 0.0  ;;  %v529_v63 = vld [vmem:[%s857_s1 + $0xb8] sm:$0xff] }
 0x289   :  { %v163_v1 = vadd.f32 1e-05, %v161_v0  ;;  %v528_v0 = vld [vmem:[%s857_s1 + $0xb0] sm:$0xff] }
 0x28b   :  { %642 = vrsqrt.f32 %v163_v1  ;;  %v527_v1 = vld [vmem:[%s857_s1 + $0xa8] sm:$0xff] }
 0x298   :  { %v643_v10 = vpop.eup %642 }
 0x299   :  { %v165_v11 = vmul.f32 %v643_v10, %v162_v8 }
 0x29b   :  { %v170_v13 = vmul.f32 %v169_v9, %v165_v11 }
 0x29d   :  { %v175_v14 = vadd.f32 %v174_v12, %v170_v13 }
 0x29f   :  { %v176_v16 = vmax.f32 %v175_v14, 0.0  ;;  %v407_v14 = vsub.s32 5, %v674_v3 }
 0x2a1   :  { %v177_v17 = vmul.f32 %v176_v16, %v176_v16 }
 0x2a3   :  { %v178_v18 = vmul.f32 %v177_v17, %v176_v16  ;;  %v403_v16 = vrot.slane %v731_v33, %v29_v6 }
 0x2a5   :  { %600 = vmatmul.mubr.msk.f32.vlgmr.msra.gmra.mxu1 %vm32_vm0, %v178_v18 }
 0x2a6   :  { %633 = vmatprep.mubr.msk.f32.mxu1 %vm650_vm2, %v649_v15  ;;  %620 = vmatpush3.msk.msra.mxu1 %vm76_vm1, %v533_v59 }
 0x2a7   :  { %621 = vmatprep.subr.mxu1 %v649_v15 }
 0x2a8   :  { %622 = vmatpush3.msra.mxu1 %v532_v60 }
 0x2a9   :  { %623 = vmatprep.subr.mxu1 %v649_v15 }
 0x2aa   :  { %624 = vmatpush3.msra.mxu1 %v531_v61 }
 0x2ab   :  { %625 = vmatprep.subr.mxu1 %v649_v15 }
 0x2ac   :  { %626 = vmatpush3.msra.mxu1 %v530_v62 }
 0x2ad   :  { %627 = vmatprep.subr.mxu1 %v649_v15 }
 0x2ae   :  { %628 = vmatpush3.msra.mxu1 %v529_v63 }
 0x2af   :  { %629 = vmatprep.subr.mxu1 %v649_v15 }
 0x2b0   :  { %630 = vmatpush3.msra.mxu1 %v528_v0 }
 0x2b1   :  { %631 = vmatprep.subr.mxu1 %v649_v15  ;;  %v408_v15 = vrot.slane %v731_v33, %v407_v14 }
 0x2b2   :  { %632 = vmatpush3.msra.mxu1 %v527_v1 }
 0x365   :  { %v263_v20 = vpop.f32.mrf.mxu1 }
 0x366   :  { %v264_v21 = vadd.f32 %v263_v20, %v190_v19 }
 0x367   :  { %v601_v22 = vpop.f32.mrf.mxu1 }
 0x368   :  { %v267_v23 = vsel %vm32_vm0, %v264_v21, 0.0  ;;  %v270_v24 = vmul.f32 %v264_v21, %v264_v21 }
 0x369   :  { %268 = vadd.xlane.f32.xlu1 %v267_v23 }
 0x36a   :  { %v271_v25 = vsel %vm32_vm0, %v270_v24, 0.0 }
 0x36d   :  { %272 = vadd.xlane.f32.xlu1 %v271_v25  ;;  %v424_v25 = vrot.slane %v680_v5, %v407_v14 }
 0x3f2   :  { %v269_v34 = vpop.xlane.xlu1 %268 }
 0x3f3   :  { %v274_v35 = vmul.f32 0.02, %v269_v34 }
 0x3f5   :  { %v276_v37 = vmul.f32 %v274_v35, %v274_v35  ;;  %v279_v44 = vsub.f32 %v264_v21, %v274_v35 }
 0x3f6   :  { %v273_v36 = vpop.xlane.xlu1 %272 }
 0x3f7   :  { %v275_v38 = vmul.f32 0.02, %v273_v36 }
 0x3f9   :  { %v277_v39 = vsub.f32 %v275_v38, %v276_v37 }
 0x3fb   :  { %v278_v40 = vmax.f32 %v277_v39, 0.0 }
 0x3fd   :  { %v280_v41 = vadd.f32 1e-05, %v278_v40 }
 0x3ff   :  { %644 = vrsqrt.f32 %v280_v41 }
 0x40c   :  { %v645_v45 = vpop.eup %644 }
 0x40d   :  { %v282_v46 = vmul.f32 %v645_v45, %v279_v44 }
 0x40f   :  { %v287_v48 = vmul.f32 %v286_v43, %v282_v46 }
 0x411   :  { %v292_v49 = vadd.f32 %v291_v47, %v287_v48 }
 0x413   :  { %v293_v50 = vmax.f32 %v292_v49, 0.0 }
 0x415   :  { %v294_v51 = vmul.f32 %v293_v50, %v293_v50 }
 0x417   :  { %v295_v52 = vmul.f32 %v294_v51, %v293_v50 }
 0x419   :  { %617 = vmatmul.mubr.msk.f32.vlgmr.msra.gmra.mxu0 %vm32_vm0, %v295_v52 }
 0x4d9   :  { %v380_v54 = vpop.f32.mrf.mxu0 }
 0x4da   :  { %v381_v55 = vadd.f32 %v380_v54, %v307_v53 }
 0x4db   :  { %v618_v56 = vpop.f32.mrf.mxu0 }
 0x4dc   :  { %v384_v57 = vsel %vm32_vm0, %v381_v55, 0.0  ;;  %v387_v4 = vmul.f32 %v381_v55, %v381_v55 }
 0x4dd   :  { %385 = vadd.xlane.f32.xlu1 %v384_v57 }
 0x4de   :  { %v388_v58 = vsel %vm32_vm0, %v387_v4, 0.0 }
 0x4e1   :  { %389 = vadd.xlane.f32.xlu1 %v388_v58 }
 0x566   :  { %v386_v2 = vpop.xlane.xlu1 %385 }
 0x567   :  { %v391_v7 = vmul.f32 0.02, %v386_v2 }
 0x569   :  { %v393_v9 = vmul.f32 %v391_v7, %v391_v7  ;;  %v396_v17 = vsub.f32 %v381_v55, %v391_v7 }
 0x56a   :  { %v390_v8 = vpop.xlane.xlu1 %389 }
 0x56b   :  { %v392_v10 = vmul.f32 0.02, %v390_v8 }
 0x56d   :  { %v394_v11 = vsub.f32 %v392_v10, %v393_v9 }
 0x56f   :  { %v395_v12 = vmax.f32 %v394_v11, 0.0 }
 0x571   :  { %v397_v13 = vadd.f32 1e-05, %v395_v12 }
 0x573   :  { %646 = vrsqrt.f32 %v397_v13 }
 0x580   :  { %v647_v18 = vpop.eup %646 }
 0x581   :  { %v399_v19 = vmul.f32 %v647_v18, %v396_v17 }
 0x583   :  { %v404_v20 = vmul.f32 %v403_v16, %v399_v19 }
 0x585   :  { %v409_v21 = vadd.f32 %v408_v15, %v404_v20 }
 0x587   :  { %v410_v22 = vmax.f32 %v409_v21, 0.0 }
 0x589   :  { %v411_v23 = vmul.f32 %v410_v22, %v410_v22 }
 0x58b   :  { %v412_v24 = vmul.f32 %v411_v23, %v410_v22 }
 0x58d   :  { %634 = vmatmul.mubr.msk.f32.vlgmr.msra.gmra.mxu1 %vm32_vm0, %v412_v24 }
 0x64d   :  { %v497_v26 = vpop.f32.mrf.mxu1 }
 0x64e   :  { %v498_v27 = vadd.f32 %v497_v26, %v424_v25 }
 0x64f   :  { %v635_v3 = vpop.f32.mrf.mxu1 }
 0x650   :  { %502 = vst.msk [vmem:[%s858_s3] sm:$0xff] %vm501_vm3, %v498_v27 }

</bundles_post_ra>
